<compile_context>
chip_gen: v6e
topology: v6e:2x2x1
jax: 0.10.0
libtpu: 0.0.40
codegen_flags: <defaults>
</compile_context>

<pallas_src>
import functools

import jax
import jax.numpy as jnp
from jax.experimental import pallas as pl
from jax.experimental.pallas import tpu as pltpu


def _cond_linear_kernel(fuse_gather, n_steps,
                        x_ref, w_ref, b_ref, g_ref, y_ref, o_ref):
    # x_ref: [TB, num_in]           (streamed batch tile)
    # w_ref: [num_in, TN]           (pre-transposed weight tile, resident)
    # b_ref: [1, TN]                (bias tile, resident)
    # g_ref: fused  -> [n_steps, TN] embedding-table tile (resident)
    #        !fused -> [TB, TN]      pre-gathered gamma tile (streamed)
    # y_ref: [TB, 1] int32 step indices (only used when fused)
    # o_ref: [TB, TN]
    out = jnp.dot(x_ref[...], w_ref[...], preferred_element_type=jnp.float32)
    out = out + b_ref[...]

    if fuse_gather:
        # gamma = embed_w[y] fused in-kernel:
        # one-hot [TB, n_steps] @ [n_steps, TN] -- second tiny MXU matmul.
        tb = x_ref.shape[0]
        steps = jax.lax.broadcasted_iota(jnp.int32, (tb, n_steps), 1)
        onehot = (steps == y_ref[...]).astype(jnp.float32)
        gamma = jnp.dot(onehot, g_ref[...], preferred_element_type=jnp.float32)
    else:
        gamma = g_ref[...].astype(jnp.float32)

    o_ref[...] = (gamma * out).astype(o_ref.dtype)


def _vmem_capacity_bytes():
    """Per-TensorCore VMEM capacity; conservative fallback if query fails."""
    try:
        info = pltpu.get_tpu_info()
        cap = getattr(info, "vmem_capacity_bytes", None)
        if cap:
            return int(cap)
    except Exception:
        pass
    return 64 * 1024 * 1024  # v7x (smallest current generation)


def _pick_tiles(B, num_in, num_out, n_steps, fuse_gather,
                itemsize, vmem_budget):
    """Pick (tb, tn, footprint_bytes).

    NOTE: Pallas double-buffers *every* input by default, including operands
    whose block index never changes, so the resident params are counted x2.
    (Alternative: pipeline_mode=pl.Buffered(1) on the constant specs.)
    """
    emb_rows = n_steps if fuse_gather else 0

    def resident_bytes(tn):
        return 2 * (num_in * tn + emb_rows * tn + tn) * itemsize

    # num_out tile: keep resident weight/bias/table within half the budget.
    if num_out <= 128 or resident_bytes(num_out) <= vmem_budget // 2:
        tn = num_out
    else:
        per_col = 2 * (num_in + emb_rows + 1) * itemsize
        tn = ((vmem_budget // 2) // per_col) // 128 * 128
        tn = max(128, min(tn, num_out))
        # TODO(synk): if even a 128-wide weight column slab cannot fit, add a
        # K (num_in) reduction axis with a VMEM accumulator.

    resident = resident_bytes(tn)
    gamma_cols = 0 if fuse_gather else tn
    # Streamed per batch row: x + y + out (+ gamma), all double-buffered.
    per_row = 2 * (num_in + 1 + tn + gamma_cols) * itemsize
    avail = max(vmem_budget - resident, per_row * 8)
    tb = min(B, avail // per_row)

    # Guarantee >= 2 batch-grid steps when B allows 8-row tiles: v7x's two
    # TensorCores both get work, and the pipeline can overlap DMA / compute.
    if B >= 16:
        tb = min(tb, -(-B // 2))

    if tb < B:
        if tb >= 256:
            tb = (tb // 256) * 256          # MXU M granularity (v6e/v7x)
        else:
            tb = max(8, (tb // 8) * 8)      # sublane granularity
    else:
        tb = B

    footprint = resident + 2 * tb * (num_in + 1 + tn + gamma_cols) * itemsize
    return tb, tn, footprint


def conditional_linear(x, y, lin_weight, lin_bias, embed_weight, *,
                       stream_dtype=None):
    """x: [B, num_in] f32, y: [B] int step indices.

    lin_weight:   [num_out, num_in] (PyTorch convention)
    lin_bias:     [num_out]
    embed_weight: [n_steps, num_out]
    stream_dtype: optionally jnp.bfloat16 to halve x/weight HBM traffic
                  (f32 accumulation; deliberate numerics deviation).
    Returns [B, num_out] f32.
    """
    B, num_in = x.shape
    num_out = lin_weight.shape[0]
    n_steps = embed_weight.shape[0]

    # One wrapper-side transpose per call (tiny vs. streamed x for real B);
    # guarantees no per-grid-step transpose of the loop-invariant weight.
    w_t = lin_weight.T                               # [num_in, num_out]
    if stream_dtype is not None:
        x = x.astype(stream_dtype)
        w_t = w_t.astype(stream_dtype)

    b2d = lin_bias.reshape(1, num_out).astype(jnp.float32)
    y2d = y.reshape(B, 1).astype(jnp.int32)

    # Fuse the embedding gather only while the one-hot contraction dim stays
    # small; for n_steps >> num_in gather wrapper-side and stream gamma.
    fuse_gather = n_steps <= max(num_in, 128)

    cap = _vmem_capacity_bytes()
    vmem_budget = max(16 << 20, int(cap * 0.55))
    tb, tn, footprint = _pick_tiles(B, num_in, num_out, n_steps,
                                    fuse_gather, 4, vmem_budget)
    grid = (pl.cdiv(B, tb), pl.cdiv(num_out, tn))

    if fuse_gather:
        g_arr = embed_weight.astype(jnp.float32)                  # [n_steps, num_out]
        g_spec = pl.BlockSpec((n_steps, tn), lambda i, j: (0, j))
        gather_flops = 2 * B * n_steps * num_out
    else:
        g_arr = jnp.take(embed_weight, y, axis=0).astype(jnp.float32)  # [B, num_out]
        g_spec = pl.BlockSpec((tb, tn), lambda i, j: (i, j))
        gather_flops = 0

    kernel = functools.partial(_cond_linear_kernel, fuse_gather, n_steps)

    flops = 2 * B * num_in * num_out + gather_flops
    bytes_accessed = int(
        x.size * x.dtype.itemsize + w_t.size * w_t.dtype.itemsize
        + b2d.size * 4 + g_arr.size * 4 + y2d.size * 4 + B * num_out * 4)

    # Explicit scoped-VMEM limit from the real footprint (+25% and 4 MiB
    # headroom), floored at 32 MiB and capped safely below physical capacity.
    vmem_limit = int(min(max(32 << 20, footprint * 5 // 4 + (4 << 20)),
                         cap - (4 << 20)))

    return pl.pallas_call(
        kernel,
        out_shape=jax.ShapeDtypeStruct((B, num_out), jnp.float32),
        grid=grid,
        in_specs=[
            pl.BlockSpec((tb, num_in), lambda i, j: (i, 0)),   # x tile
            pl.BlockSpec((num_in, tn), lambda i, j: (0, j)),   # weight (resident)
            pl.BlockSpec((1, tn), lambda i, j: (0, j)),        # bias (resident)
            g_spec,                                            # embed table / gamma
            pl.BlockSpec((tb, 1), lambda i, j: (i, 0)),        # y tile
        ],
        out_specs=pl.BlockSpec((tb, tn), lambda i, j: (i, j)),
        compiler_params=pltpu.CompilerParams(
            dimension_semantics=("parallel", "parallel"),
            vmem_limit_bytes=vmem_limit,
        ),
        cost_estimate=pl.CostEstimate(
            flops=flops, transcendentals=0, bytes_accessed=bytes_accessed),
    )(x, w_t, b2d, g_arr, y2d)


def init_params(key, num_in, num_out, n_steps):
    """Deterministic init matching PyTorch defaults.

    nn.Linear: weight, bias ~ U(-1/sqrt(num_in), 1/sqrt(num_in))
    nn.Embedding after .uniform_(): weight ~ U[0, 1)
    """
    k_w, k_b, k_e = jax.random.split(key, 3)
    bound = 1.0 / jnp.sqrt(jnp.float32(num_in))
    lin_weight = jax.random.uniform(
        k_w, (num_out, num_in), jnp.float32, minval=-bound, maxval=bound)
    lin_bias = jax.random.uniform(
        k_b, (num_out,), jnp.float32, minval=-bound, maxval=bound)
    embed_weight = jax.random.uniform(
        k_e, (n_steps, num_out), jnp.float32, minval=0.0, maxval=1.0)
    return lin_weight, lin_bias, embed_weight


if __name__ == "__main__":
    key = jax.random.PRNGKey(0)
    k_params, k_x, k_y = jax.random.split(key, 3)

    batch, num_in, num_out, n_steps = 8, 32, 128, 10

    lin_weight, lin_bias, embed_weight = init_params(
        k_params, num_in, num_out, n_steps)

    x = jax.random.normal(k_x, (batch, num_in), jnp.float32)
    y = jax.random.randint(k_y, (batch,), 0, n_steps, jnp.int32)

    out = jax.jit(conditional_linear)(x, y, lin_weight, lin_bias, embed_weight)
    out = jax.block_until_ready(out)

    # Reference check in plain JAX (same math as the PyTorch forward).
    ref = embed_weight[y] * (x @ lin_weight.T + lin_bias)
    assert out.shape == (batch, num_out)
    assert jnp.allclose(out, ref, atol=1e-5, rtol=1e-5), float(
        jnp.max(jnp.abs(out - ref)))

    print("KERNEL_OK")
</pallas_src>

<mosaic_0001>
module attributes {stable_mosaic.version = 11 : i64} {
  func.func @_cond_linear_kernel(%arg0: i32, %arg1: i32, %arg2: memref<8x32xf32, #tpu.memory_space<vmem>>, %arg3: memref<32x128xf32, #tpu.memory_space<vmem>>, %arg4: memref<1x128xf32, #tpu.memory_space<vmem>>, %arg5: memref<10x128xf32, #tpu.memory_space<vmem>>, %arg6: memref<8x1xi32, #tpu.memory_space<vmem>>, %arg7: memref<8x128xf32, #tpu.memory_space<vmem>>) attributes {dimension_semantics = [#tpu.dimension_semantics<parallel>, #tpu.dimension_semantics<parallel>], iteration_bounds = array<i64: 1, 1>, scalar_prefetch = 0 : i64, scratch_operands = 0 : i64, tpu.core_type = #tpu.core_type<tc>, window_params = [{transform_indices = @transform_0, window_bounds = array<i64: 8, 32>}, {transform_indices = @transform_1, window_bounds = array<i64: 32, 128>}, {transform_indices = @transform_2, window_bounds = array<i64: 1, 128>}, {transform_indices = @transform_3, window_bounds = array<i64: 10, 128>}, {transform_indices = @transform_4, window_bounds = array<i64: 8, 1>}, {transform_indices = @transform_5, window_bounds = array<i64: 8, 128>}]} {
    %c0 = arith.constant 0 : index
    %c0_0 = arith.constant 0 : index
    %0 = vector.load %arg2[%c0, %c0_0] : memref<8x32xf32, #tpu.memory_space<vmem>>, vector<8x32xf32>
    %c0_1 = arith.constant 0 : index
    %c0_2 = arith.constant 0 : index
    %1 = vector.load %arg3[%c0_1, %c0_2] : memref<32x128xf32, #tpu.memory_space<vmem>>, vector<32x128xf32>
    %cst = arith.constant dense<0.000000e+00> : vector<8x128xf32>
    %2 = tpu.matmul %0, %1, %cst {dimension_numbers = #tpu.dot_dimension_numbers<[1], [0], [0], [1], [0, 0, 1, 1], [], []>} : vector<8x32xf32>, vector<32x128xf32>, vector<8x128xf32> -> vector<8x128xf32>
    %c0_3 = arith.constant 0 : index
    %c0_4 = arith.constant 0 : index
    %3 = vector.load %arg4[%c0_3, %c0_4] : memref<1x128xf32, #tpu.memory_space<vmem>>, vector<1x128xf32>
    %4 = vector.broadcast %3 : vector<1x128xf32> to vector<8x128xf32>
    %5 = arith.addf %2, %4 : vector<8x128xf32>
    %6 = tpu.iota {dimensions = array<i32: 1>} : vector<8x10xi32>
    %c0_5 = arith.constant 0 : index
    %c0_6 = arith.constant 0 : index
    %7 = vector.load %arg6[%c0_5, %c0_6] : memref<8x1xi32, #tpu.memory_space<vmem>>, vector<8x1xi32>
    %8 = vector.broadcast %7 : vector<8x1xi32> to vector<8x10xi32>
    %9 = arith.cmpi eq, %6, %8 : vector<8x10xi32>
    %10 = arith.extui %9 : vector<8x10xi1> to vector<8x10xi32>
    %11 = arith.sitofp %10 : vector<8x10xi32> to vector<8x10xf32>
    %c0_7 = arith.constant 0 : index
    %c0_8 = arith.constant 0 : index
    %12 = vector.load %arg5[%c0_7, %c0_8] : memref<10x128xf32, #tpu.memory_space<vmem>>, vector<10x128xf32>
    %cst_9 = arith.constant dense<0.000000e+00> : vector<8x128xf32>
    %13 = tpu.matmul %11, %12, %cst_9 {dimension_numbers = #tpu.dot_dimension_numbers<[1], [0], [0], [1], [0, 0, 1, 1], [], []>} : vector<8x10xf32>, vector<10x128xf32>, vector<8x128xf32> -> vector<8x128xf32>
    %14 = arith.mulf %13, %5 : vector<8x128xf32>
    %c0_10 = arith.constant 0 : index
    %c0_11 = arith.constant 0 : index
    %15 = vector.load %arg7[%c0_10, %c0_11] : memref<8x128xf32, #tpu.memory_space<vmem>>, vector<8x128xf32>
    tpu.vector_store %arg7[%c0_10, %c0_11], %14 {strides = array<i32>} : memref<8x128xf32, #tpu.memory_space<vmem>>, vector<8x128xf32>,
    return
  }
  func.func @transform_0(%arg0: i32, %arg1: i32) -> (i32, i32) {
    %c0_i32 = arith.constant 0 : i32
    %c0_i32_0 = arith.constant 0 : i32
    return %arg0, %c0_i32 : i32, i32
  }
  func.func @transform_1(%arg0: i32, %arg1: i32) -> (i32, i32) {
    %c0_i32 = arith.constant 0 : i32
    %c0_i32_0 = arith.constant 0 : i32
    return %c0_i32, %arg1 : i32, i32
  }
  func.func @transform_2(%arg0: i32, %arg1: i32) -> (i32, i32) {
    %c0_i32 = arith.constant 0 : i32
    %c0_i32_0 = arith.constant 0 : i32
    return %c0_i32, %arg1 : i32, i32
  }
  func.func @transform_3(%arg0: i32, %arg1: i32) -> (i32, i32) {
    %c0_i32 = arith.constant 0 : i32
    %c0_i32_0 = arith.constant 0 : i32
    return %c0_i32, %arg1 : i32, i32
  }
  func.func @transform_4(%arg0: i32, %arg1: i32) -> (i32, i32) {
    %c0_i32 = arith.constant 0 : i32
    %c0_i32_0 = arith.constant 0 : i32
    return %arg0, %c0_i32 : i32, i32
  }
  func.func @transform_5(%arg0: i32, %arg1: i32) -> (i32, i32) {
    %c0_i32 = arith.constant 0 : i32
    return %arg0, %arg1 : i32, i32
  }
}

</mosaic_0001>

<bundles_post_ra>
// kernel: conditional_linear.1
= control target key start
LH: loop header
LB: loop body
LE: loop exit
PB: predicated region body
PF: predicated region fallthrough
CT: control target
= control target key end

     0   :  { %10 = vsyncpa [#allocation3], 0  ;;  %s405_s0 = inlined_call_operand.hbm [shape: f32[8,32], index: 0, kind: input, shape index: {}]   ;;  %s406_s1 = inlined_call_operand.hbm [shape: f32[32,128], index: 1, kind: input, shape index: {}]   ;;  %s407_s2 = inlined_call_operand.vmem [shape: f32[1,128], index: 2, kind: input, shape index: {}]   ;;  %s408_s3 = inlined_call_operand.vmem [shape: f32[10,128], index: 3, kind: input, shape index: {}]   ;;  %s409_s4 = inlined_call_operand.vmem [shape: s32[8,1], index: 4, kind: input, shape index: {}]   ;;  %s410_s5 = inlined_call_operand.hbm [shape: f32[8,128], index: 5, kind: output, shape index: {}]  }
   0x1   :  { %11 = vsyncpa [#allocation6], 0 }
   0x2   :  { %12 = vsyncpa [#allocation4], 0  ;;  %s346_s18 = smov [#allocation2]   ;;  %s347_s20 = smov [#allocation5]  }
   0x3   :  { %s19_s19 = sshll.u32 %s346_s18, 4  ;;  %s28_s21 = sshll.u32 %s347_s20, 4  ;;  %s20_s19 = int_to_ptr.vmem [resolvable:$true] %s19_s19  ;;  %s29_s21 = int_to_ptr.vmem [resolvable:$true] %s28_s21 }
   0x4   :  { %s288_s22 = scalar_lea.vmem %s20_s19, 128  ;;  %p293_p1 = scmp.lt.s32.totalorder %s20_s19, %s20_s19 }
   0x5   :  { %p289_p0 = scmp.ne.s32.totalorder %s20_s19, %s288_s22  ;;  %p294_p2 = scmp.lt.s32.totalorder %s288_s22, %s288_s22 }
   0x7   :  { %p295_p3 = por %p294_p2, %p293_p1 }
   0x9   :  { %p296_p4 = pnand %p295_p3, %p289_p0 }
   0xb   :  { %299 = shalt.err (!%p296_p4)
}
   0xc   :  { %22 = dma.hbm_to_vmem [thread:$0]  %s405_s0, 128, %s20_s19, [#allocation3]  }
   0xd   :  { %s308_s25 = scalar_lea.vmem %s29_s21, 512  ;;  %p313_p6 = scmp.lt.s32.totalorder %s29_s21, %s29_s21 }
   0xe   :  { %p309_p5 = scmp.ne.s32.totalorder %s29_s21, %s308_s25  ;;  %p314_p7 = scmp.lt.s32.totalorder %s308_s25, %s308_s25 }
  0x10   :  { %p315_p8 = por %p314_p7, %p313_p6 }
  0x12   :  { %p316_p9 = pnand %p315_p8, %p309_p5 }
  0x14   :  { %319 = shalt.err (!%p316_p9)
}
  0x15   :  { %s348_s26 = smov 128   ;;  %s349_s27 = smov 8  }
  0x16   :  { %34 = dma.hbm_to_vmem [thread:$0]  %s406_s1, 512, %s29_s21, [#allocation6], %s348_s26, %s348_s26, %s349_s27  }
  0x17   :  { %340 = dma.done.wait [#allocation3], 128  }
  0x18   :  { %341 = vsyncadd [#allocation3], 4294967168 }
  0x19   :  { %342 = dma.done.wait [#allocation6], 512  }
  0x1a   :  { %343 = vsyncadd [#allocation6], 4294966784  ;;  %v350_v0 = vmov 0   ;;  %v351_v1 = vmov 0.0   ;;  %vm352_vm0 = vmmov 0   ;;  %v135_v2 = vld [vmem:[%s409_s4] sm:$0xff]  ;;  %v133_v10 = vlaneseq }
  0x1b   :  { %279 = vset.pattern.permute.xlu0 %v350_v0  ;;  %253 = vmatprep.subr.mxu0 %v351_v1  ;;  %v51_v3 = vld [vmem:[#allocation5 + $0x18] sm:$0xff]  ;;  %v50_v4 = vld [vmem:[#allocation5 + $0x10] sm:$0xff]  ;;  %vm148_vm1 = vcmask 1041408   ;;  %v49_v5 = vld [vmem:[#allocation5 + $0x8] sm:$0xff]  ;;  %vm59_vm2 = vcmask 261120   ;;  %vm144_vm3 = vcmask 80896  }
  0x1c   :  { %261 = vmatprep.mubr.msk.f32.mxu0 %vm352_vm0, %v351_v1  ;;  %264 = vmatprep.subr.mxu1 %v351_v1  ;;  %v143_v6 = vld [vmem:[%s408_s3 + $0x8] sm:$0x3]  ;;  %v142_v7 = vld [vmem:[%s408_s3] sm:$0xff]  ;;  %v134_v11 = vand.u32 127, %v133_v10  ;;  %s353_s9 = smov [#allocation7]  }
  0x1d   :  { %268 = vmatprep.mubr.msk.f32.mxu1 %vm352_vm0, %v351_v1  ;;  %137 = vperm.xlu0 %279, %v135_v2   ;;  %v48_v8 = vld [vmem:[#allocation5] sm:$0xff]  ;;  %v47_v9 = vld [vmem:[#allocation2] sm:$0xff]  ;;  %s230_s10 = sshll.u32 %s353_s9, 4  ;;  %s231_s10 = int_to_ptr.vmem [resolvable:$true] %s230_s10 }
  0x1e   :  { %254 = vmatpush3.msra.mxu0 %v51_v3  ;;  %265 = vmatpush3.msk.msra.mxu1 %vm148_vm1, %v143_v6  ;;  %v240_v16 = vld [vmem:[%s407_s2] ss:$0 sm:$0xff]  ;;  %s320_s11 = scalar_lea.vmem %s231_s10, 128  ;;  %p325_p11 = scmp.lt.s32.totalorder %s231_s10, %s231_s10 }
  0x1f   :  { %255 = vmatprep.subr.mxu0 %v351_v1  ;;  %266 = vmatprep.subr.mxu1 %v351_v1  ;;  %p321_p10 = scmp.ne.s32.totalorder %s231_s10, %s320_s11  ;;  %p326_p12 = scmp.lt.s32.totalorder %s320_s11, %s320_s11 }
  0x20   :  { %256 = vmatpush3.msra.mxu0 %v50_v4  ;;  %267 = vmatpush3.msra.mxu1 %v142_v7 }
  0x21   :  { %257 = vmatprep.subr.mxu0 %v351_v1  ;;  %p327_p13 = por %p326_p12, %p325_p11 }
  0x22   :  { %258 = vmatpush3.msra.mxu0 %v49_v5 }
  0x23   :  { %259 = vmatprep.subr.mxu0 %v351_v1  ;;  %p328_p0 = pnand %p327_p13, %p321_p10 }
  0x24   :  { %260 = vmatpush3.msra.mxu0 %v48_v8 }
  0x25   :  { %262 = vmatmul.mubr.msk.f32.vlgmr.msra.gmra.mxu0 %vm59_vm2, %v47_v9 }
  0x98   :  { %v138_v12 = vpop.permute.xlu0 %137 }
  0x99   :  { %vm139_vm4 = vcmp.eq.s32.totalorder %v134_v11, %v138_v12 }
  0x9a   :  { %v242_v13 = vsel %vm139_vm4, 1.0, %v351_v1 }
  0x9b   :  { %269 = vmatmul.mubr.msk.f32.vlgmr.msra.gmra.mxu1 %vm144_vm3, %v242_v13 }
  0xe5   :  { %v129_v14 = vpop.f32.mrf.mxu0 }
  0xe6   :  { %v130_v17 = vadd.f32 %v240_v16, %v129_v14 }
  0xe7   :  { %v263_v15 = vpop.f32.mrf.mxu0 }
 0x15b   :  { %v218_v18 = vpop.f32.mrf.mxu1 }
 0x15c   :  { %v222_v19 = vmul.f32 %v218_v18, %v130_v17 }
 0x15d   :  { %v270_v20 = vpop.f32.mrf.mxu1 }
 0x15e   :  { %223 = vst [vmem:[#allocation7] sm:$0xff] %v222_v19 }
 0x15f   :  { %331 = shalt.err (!%p328_p0)
}
 0x160   :  { %233 = dma.vmem_to_hbm [thread:$0]  %s231_s10, 128, %s410_s5, [#allocation4]  }
 0x161   :  { %344 = dma.done.wait [#allocation4], 128  }
 0x162   :  { %345 = vsyncadd [#allocation4], 4294967168 }
 0x163   :  { %237 = vsyncpa [#allocation3], 1 }
 0x164   :  { %238 = vsyncpa [#allocation6], 1 }
 0x165   :  { %239 = vsyncpa [#allocation4], 1 }

</bundles_post_ra>
